<compile_context>
chip_gen: v7x
topology: tpu7x:2x2x1
jax: 0.10.0
libtpu: 0.0.40
codegen_flags: <defaults>
</compile_context>

<pallas_src>
import functools

import jax
import jax.numpy as jnp
from jax.experimental import pallas as pl
from jax.experimental.pallas import tpu as pltpu

LANE = 128
_MASK_FILL = -1e30  # large negative finite: exp() underflows to exactly 0


def _round_up(x, m):
    return ((x + m - 1) // m) * m


def _classifier_kernel(n_hidden, n_classes, *refs):
    """Fused MLP + tanh + masked log-softmax.

    refs = (x_ref,
            w0_ref, b0_ref, ..., w_{n_hidden-1}_ref, b_{n_hidden-1}_ref,
            wf_ref, bf_ref,
            out_ref)
    Weights are bf16, biases f32, x/out f32.  All class/hidden dims are
    128-lane padded; padded class lanes are masked out of the softmax.
    """
    x_ref = refs[0]
    out_ref = refs[-1]
    param_refs = refs[1:-1]

    # bf16 activations feeding the MXU, f32 accumulation everywhere.
    h = x_ref[...].astype(jnp.bfloat16)

    for i in range(n_hidden):
        w = param_refs[2 * i][...]                     # (K, Npad) bf16
        b = param_refs[2 * i + 1][...]                 # (1, Npad) f32
        z = jnp.dot(h, w, preferred_element_type=jnp.float32) + b
        h = jnp.tanh(z).astype(jnp.bfloat16)           # tanh in f32, cast down

    wf = param_refs[2 * n_hidden][...]
    bf = param_refs[2 * n_hidden + 1][...]
    logits = jnp.tanh(jnp.dot(h, wf, preferred_element_type=jnp.float32) + bf)

    # Numerically-stable log-softmax over the real classes only; padded lanes
    # are filled with a huge negative so exp() contributes exactly 0.
    col = jax.lax.broadcasted_iota(jnp.int32, logits.shape, 1)
    masked = jnp.where(col < n_classes, logits, jnp.float32(_MASK_FILL))
    m = jnp.max(masked, axis=1, keepdims=True)
    shifted = masked - m
    lse = jnp.log(jnp.sum(jnp.exp(shifted), axis=1, keepdims=True))
    out_ref[...] = (shifted - lse).astype(out_ref.dtype)


def classifier_forward(embedding, padded_params, n_classes, *, block_b=512):
    """Run the fused classifier Pallas kernel.

    embedding:     (B, n_dimensions) float32
    padded_params: list of (W, b) with W:(in_pad, out_pad) bf16,
                   b:(1, out_pad) f32 (from pad_params_for_kernel)
    n_classes:     number of real (unpadded) classes
    returns:       (B, n_classes) float32 log-probabilities
    """
    n_layers = len(padded_params)
    n_hidden = n_layers - 1

    flat_params = []
    for w, b in padded_params:
        flat_params += [w, b]

    B, D = embedding.shape
    C_pad = padded_params[-1][0].shape[1]

    # Batch tile: full batch if small, else 512 (multiple of 128/256 MXU edges
    # and of the 8-sublane constraint).
    TB = B if B <= block_b else block_b
    grid = (pl.cdiv(B, TB),)

    in_specs = [pl.BlockSpec((TB, D), lambda i: (i, 0))]
    # Parameters: constant block index -> resident in VMEM across all steps.
    in_specs += [pl.BlockSpec(p.shape, lambda i: (0, 0)) for p in flat_params]
    out_spec = pl.BlockSpec((TB, C_pad), lambda i: (i, 0))

    # Advisory cost estimate for XLA's scheduler.
    flops = 0
    transcendentals = 0
    for w, _ in padded_params:
        flops += 2 * B * w.shape[0] * w.shape[1]
        transcendentals += B * w.shape[1]          # tanh per layer output
    transcendentals += B * C_pad                   # exp in log-softmax
    bytes_accessed = (
        embedding.size * embedding.dtype.itemsize
        + sum(int(p.size) * p.dtype.itemsize for p in flat_params)
        + B * C_pad * 4
    )

    kernel = functools.partial(_classifier_kernel, n_hidden, n_classes)

    out_padded = pl.pallas_call(
        kernel,
        out_shape=jax.ShapeDtypeStruct((B, C_pad), jnp.float32),
        grid=grid,
        in_specs=in_specs,
        out_specs=out_spec,
        compiler_params=pltpu.CompilerParams(
            dimension_semantics=("parallel",)),
        cost_estimate=pl.CostEstimate(
            flops=flops,
            transcendentals=transcendentals,
            bytes_accessed=bytes_accessed),
    )(embedding, *flat_params)

    # Drop the padded class lanes (lane-dense store inside the kernel).
    return out_padded[:, :n_classes]


def init_classifier_params(key, n_dimensions, n_classes, linear=()):
    """Deterministic f32 parameter init matching nn.Linear shapes.

    PyTorch nn.Linear(in, out) stores weight (out, in), bias (out,); we store
    weight transposed as (in, out) so the kernel computes x @ W + b, which is
    numerically identical to x @ W.T + b for these parameters.
    """
    dims = list(linear) + [n_classes]
    in_dim = n_dimensions
    params = []
    for out_dim in dims:
        key, kw, kb = jax.random.split(key, 3)
        bound = 1.0 / jnp.sqrt(jnp.float32(in_dim))
        w = jax.random.uniform(kw, (in_dim, out_dim), jnp.float32, -bound, bound)
        b = jax.random.uniform(kb, (out_dim,), jnp.float32, -bound, bound)
        params.append((w, b))
        in_dim = out_dim
    return params


def pad_params_for_kernel(params):
    """Zero-pad hidden/class dims to multiples of 128 and cast weights to bf16.

    Padded weight rows/columns and bias entries are zero, so padded activation
    lanes stay tanh(0)=0 and contribute nothing to the next matmul.  The first
    layer's input dim is left unpadded to match the embedding's feature dim.
    """
    padded = []
    for idx, (w, b) in enumerate(params):
        in_dim, out_dim = w.shape
        in_pad = in_dim if idx == 0 else _round_up(in_dim, LANE)
        out_pad = _round_up(out_dim, LANE)
        w_p = jnp.zeros((in_pad, out_pad), jnp.float32)
        w_p = w_p.at[:in_dim, :out_dim].set(w)
        b_p = jnp.zeros((1, out_pad), jnp.float32)
        b_p = b_p.at[0, :out_dim].set(b)
        padded.append((w_p.astype(jnp.bfloat16), b_p))
    return padded


def classifier_reference_f32(embedding, params):
    """Pure-JAX f32 reference (exact module semantics, unpadded params)."""
    h = embedding
    for w, b in params[:-1]:
        h = jnp.tanh(h @ w + b)
    wf, bf = params[-1]
    logits = jnp.tanh(h @ wf + bf)
    return jax.nn.log_softmax(logits, axis=1)


def classifier_reference_bf16(embedding, padded_params, n_classes):
    """Pure-JAX reference with the same bf16/padded parameters as the kernel."""
    h = embedding.astype(jnp.bfloat16)
    for w, b in padded_params[:-1]:
        z = jnp.dot(h, w, preferred_element_type=jnp.float32) + b
        h = jnp.tanh(z).astype(jnp.bfloat16)
    wf, bf = padded_params[-1]
    logits = jnp.tanh(jnp.dot(h, wf, preferred_element_type=jnp.float32) + bf)
    return jax.nn.log_softmax(logits[:, :n_classes], axis=1)


if __name__ == "__main__":
    # Small shapes consistent with the module:
    #   n_dimensions=32, linear=[64, 48], n_classes=16, batch=8
    B, n_dimensions, n_classes = 8, 32, 16
    linear = [64, 48]

    key = jax.random.PRNGKey(0)
    key, k_emb = jax.random.split(key)
    embedding = jax.random.normal(k_emb, (B, n_dimensions), jnp.float32)

    params_f32 = init_classifier_params(key, n_dimensions, n_classes, linear)
    padded_params = pad_params_for_kernel(params_f32)

    out = classifier_forward(embedding, padded_params, n_classes)
    out = jax.block_until_ready(out)
    assert out.shape == (B, n_classes)

    # Exact check against a reference using the identical bf16/padded params.
    ref_bf16 = classifier_reference_bf16(embedding, padded_params, n_classes)
    assert jnp.allclose(out, ref_bf16, atol=1e-3, rtol=1e-3), \
        "mismatch vs bf16-matched reference"

    # Loose check against the full-f32 module semantics (bf16 weight rounding).
    ref_f32 = classifier_reference_f32(embedding, params_f32)
    assert jnp.allclose(out, ref_f32, atol=5e-2, rtol=0.0), \
        "mismatch vs f32 reference"

    # log-softmax rows should exponentiate-sum to ~1
    assert jnp.allclose(jnp.sum(jnp.exp(out), axis=1), 1.0, atol=1e-4)

    print("KERNEL_OK")
</pallas_src>

<mosaic_0001>
module attributes {stable_mosaic.version = 11 : i64} {
  func.func @_classifier_kernel(%arg0: i32, %arg1: memref<8x32xf32, #tpu.memory_space<vmem>>, %arg2: memref<32x128xbf16, #tpu.memory_space<vmem>>, %arg3: memref<1x128xf32, #tpu.memory_space<vmem>>, %arg4: memref<128x128xbf16, #tpu.memory_space<vmem>>, %arg5: memref<1x128xf32, #tpu.memory_space<vmem>>, %arg6: memref<128x128xbf16, #tpu.memory_space<vmem>>, %arg7: memref<1x128xf32, #tpu.memory_space<vmem>>, %arg8: memref<8x128xf32, #tpu.memory_space<vmem>>) attributes {dimension_semantics = [#tpu.dimension_semantics<parallel>], iteration_bounds = array<i64: 1>, scalar_prefetch = 0 : i64, scratch_operands = 0 : i64, tpu.core_type = #tpu.core_type<tc>, window_params = [{transform_indices = @transform_0, window_bounds = array<i64: 8, 32>}, {pipeline_mode = #tpu.pipeline_mode<synchronous>, transform_indices = @transform_1, window_bounds = array<i64: 32, 128>}, {pipeline_mode = #tpu.pipeline_mode<synchronous>, transform_indices = @transform_2, window_bounds = array<i64: 1, 128>}, {pipeline_mode = #tpu.pipeline_mode<synchronous>, transform_indices = @transform_3, window_bounds = array<i64: 128, 128>}, {pipeline_mode = #tpu.pipeline_mode<synchronous>, transform_indices = @transform_4, window_bounds = array<i64: 1, 128>}, {pipeline_mode = #tpu.pipeline_mode<synchronous>, transform_indices = @transform_5, window_bounds = array<i64: 128, 128>}, {pipeline_mode = #tpu.pipeline_mode<synchronous>, transform_indices = @transform_6, window_bounds = array<i64: 1, 128>}, {transform_indices = @transform_7, window_bounds = array<i64: 8, 128>}]} {
    %c0 = arith.constant 0 : index
    %c0_0 = arith.constant 0 : index
    %0 = vector.load %arg1[%c0, %c0_0] : memref<8x32xf32, #tpu.memory_space<vmem>>, vector<8x32xf32>
    %1 = arith.truncf %0 : vector<8x32xf32> to vector<8x32xbf16>
    %c0_1 = arith.constant 0 : index
    %c0_2 = arith.constant 0 : index
    %2 = vector.load %arg2[%c0_1, %c0_2] : memref<32x128xbf16, #tpu.memory_space<vmem>>, vector<32x128xbf16>
    %c0_3 = arith.constant 0 : index
    %c0_4 = arith.constant 0 : index
    %3 = vector.load %arg3[%c0_3, %c0_4] : memref<1x128xf32, #tpu.memory_space<vmem>>, vector<1x128xf32>
    %cst = arith.constant dense<0.000000e+00> : vector<8x128xf32>
    %4 = tpu.matmul %1, %2, %cst {dimension_numbers = #tpu.dot_dimension_numbers<[1], [0], [0], [1], [0, 0, 1, 1], [], []>} : vector<8x32xbf16>, vector<32x128xbf16>, vector<8x128xf32> -> vector<8x128xf32>
    %5 = vector.broadcast %3 : vector<1x128xf32> to vector<8x128xf32>
    %6 = arith.addf %4, %5 : vector<8x128xf32>
    %7 = math.tanh %6 : vector<8x128xf32>
    %8 = arith.truncf %7 : vector<8x128xf32> to vector<8x128xbf16>
    %c0_5 = arith.constant 0 : index
    %c0_6 = arith.constant 0 : index
    %9 = vector.load %arg4[%c0_5, %c0_6] : memref<128x128xbf16, #tpu.memory_space<vmem>>, vector<128x128xbf16>
    %c0_7 = arith.constant 0 : index
    %c0_8 = arith.constant 0 : index
    %10 = vector.load %arg5[%c0_7, %c0_8] : memref<1x128xf32, #tpu.memory_space<vmem>>, vector<1x128xf32>
    %cst_9 = arith.constant dense<0.000000e+00> : vector<8x128xf32>
    %11 = tpu.matmul %8, %9, %cst_9 {dimension_numbers = #tpu.dot_dimension_numbers<[1], [0], [0], [1], [0, 0, 1, 1], [], []>} : vector<8x128xbf16>, vector<128x128xbf16>, vector<8x128xf32> -> vector<8x128xf32>
    %12 = vector.broadcast %10 : vector<1x128xf32> to vector<8x128xf32>
    %13 = arith.addf %11, %12 : vector<8x128xf32>
    %14 = math.tanh %13 : vector<8x128xf32>
    %15 = arith.truncf %14 : vector<8x128xf32> to vector<8x128xbf16>
    %c0_10 = arith.constant 0 : index
    %c0_11 = arith.constant 0 : index
    %16 = vector.load %arg6[%c0_10, %c0_11] : memref<128x128xbf16, #tpu.memory_space<vmem>>, vector<128x128xbf16>
    %c0_12 = arith.constant 0 : index
    %c0_13 = arith.constant 0 : index
    %17 = vector.load %arg7[%c0_12, %c0_13] : memref<1x128xf32, #tpu.memory_space<vmem>>, vector<1x128xf32>
    %cst_14 = arith.constant dense<0.000000e+00> : vector<8x128xf32>
    %18 = tpu.matmul %15, %16, %cst_14 {dimension_numbers = #tpu.dot_dimension_numbers<[1], [0], [0], [1], [0, 0, 1, 1], [], []>} : vector<8x128xbf16>, vector<128x128xbf16>, vector<8x128xf32> -> vector<8x128xf32>
    %19 = vector.broadcast %17 : vector<1x128xf32> to vector<8x128xf32>
    %20 = arith.addf %18, %19 : vector<8x128xf32>
    %21 = math.tanh %20 : vector<8x128xf32>
    %22 = tpu.iota {dimensions = array<i32: 1>} : vector<8x128xi32>
    %c16_i32 = arith.constant 16 : i32
    %23 = vector.broadcast %c16_i32 : i32 to vector<8x128xi32>
    %24 = arith.cmpi slt, %22, %23 : vector<8x128xi32>
    %cst_15 = arith.constant -1.000000e+30 : f32
    %25 = vector.broadcast %cst_15 : f32 to vector<8x128xf32>
    %26 = arith.select %24, %21, %25 : vector<8x128xi1>, vector<8x128xf32>
    %cst_16 = arith.constant dense<0xFF800000> : vector<8xf32>
    %27 = vector.multi_reduction <maximumf>, %26, %cst_16 [1] : vector<8x128xf32> to vector<8xf32>
    %28 = vector.shape_cast %27 : vector<8xf32> to vector<8x1xf32>
    %29 = vector.broadcast %28 : vector<8x1xf32> to vector<8x128xf32>
    %30 = arith.subf %26, %29 : vector<8x128xf32>
    %31 = math.exp %30 : vector<8x128xf32>
    %cst_17 = arith.constant dense<0.000000e+00> : vector<8xf32>
    %32 = vector.multi_reduction <add>, %31, %cst_17 [1] : vector<8x128xf32> to vector<8xf32>
    %33 = vector.shape_cast %32 : vector<8xf32> to vector<8x1xf32>
    %34 = math.log %33 : vector<8x1xf32>
    %35 = vector.broadcast %34 : vector<8x1xf32> to vector<8x128xf32>
    %36 = arith.subf %30, %35 : vector<8x128xf32>
    %c0_18 = arith.constant 0 : index
    %c0_19 = arith.constant 0 : index
    %37 = vector.load %arg8[%c0_18, %c0_19] : memref<8x128xf32, #tpu.memory_space<vmem>>, vector<8x128xf32>
    tpu.vector_store %arg8[%c0_18, %c0_19], %36 {strides = array<i32>} : memref<8x128xf32, #tpu.memory_space<vmem>>, vector<8x128xf32>,
    return
  }
  func.func @transform_0(%arg0: i32) -> (i32, i32) {
    %c0_i32 = arith.constant 0 : i32
    %c0_i32_0 = arith.constant 0 : i32
    return %arg0, %c0_i32 : i32, i32
  }
  func.func @transform_1(%arg0: i32) -> (i32, i32) {
    %c0_i32 = arith.constant 0 : i32
    %c0_i32_0 = arith.constant 0 : i32
    %c0_i32_1 = arith.constant 0 : i32
    return %c0_i32, %c0_i32_0 : i32, i32
  }
  func.func @transform_2(%arg0: i32) -> (i32, i32) {
    %c0_i32 = arith.constant 0 : i32
    %c0_i32_0 = arith.constant 0 : i32
    %c0_i32_1 = arith.constant 0 : i32
    return %c0_i32, %c0_i32_0 : i32, i32
  }
  func.func @transform_3(%arg0: i32) -> (i32, i32) {
    %c0_i32 = arith.constant 0 : i32
    %c0_i32_0 = arith.constant 0 : i32
    %c0_i32_1 = arith.constant 0 : i32
    return %c0_i32, %c0_i32_0 : i32, i32
  }
  func.func @transform_4(%arg0: i32) -> (i32, i32) {
    %c0_i32 = arith.constant 0 : i32
    %c0_i32_0 = arith.constant 0 : i32
    %c0_i32_1 = arith.constant 0 : i32
    return %c0_i32, %c0_i32_0 : i32, i32
  }
  func.func @transform_5(%arg0: i32) -> (i32, i32) {
    %c0_i32 = arith.constant 0 : i32
    %c0_i32_0 = arith.constant 0 : i32
    %c0_i32_1 = arith.constant 0 : i32
    return %c0_i32, %c0_i32_0 : i32, i32
  }
  func.func @transform_6(%arg0: i32) -> (i32, i32) {
    %c0_i32 = arith.constant 0 : i32
    %c0_i32_0 = arith.constant 0 : i32
    %c0_i32_1 = arith.constant 0 : i32
    return %c0_i32, %c0_i32_0 : i32, i32
  }
  func.func @transform_7(%arg0: i32) -> (i32, i32) {
    %c0_i32 = arith.constant 0 : i32
    %c0_i32_0 = arith.constant 0 : i32
    return %arg0, %c0_i32 : i32, i32
  }
}

</mosaic_0001>

<bundles_post_ra>
// kernel: tpu_custom_call.1
= control target key start
LH: loop header
LB: loop body
LE: loop exit
PB: predicated region body
PF: predicated region fallthrough
CT: control target
= control target key end

     0   :  { %12 = vsyncpa [#allocation3], 0  ;;  %s806_s0 = inlined_call_operand.hbm [shape: f32[8,32], index: 0, kind: input, shape index: {}]   ;;  %s807_s1 = inlined_call_operand.hbm [shape: bf16[32,128], index: 1, kind: input, shape index: {}]   ;;  %s808_s2 = inlined_call_operand.vmem [shape: f32[1,128], index: 2, kind: input, shape index: {}]   ;;  %s809_s3 = inlined_call_operand.hbm [shape: bf16[128,128], index: 3, kind: input, shape index: {}]   ;;  %s810_s4 = inlined_call_operand.vmem [shape: f32[1,128], index: 4, kind: input, shape index: {}]   ;;  %s811_s5 = inlined_call_operand.hbm [shape: bf16[128,128], index: 5, kind: input, shape index: {}]   ;;  %s812_s6 = inlined_call_operand.vmem [shape: f32[1,128], index: 6, kind: input, shape index: {}]   ;;  %s813_s7 = inlined_call_operand.hbm [shape: f32[8,128], index: 7, kind: output, shape index: {}]  }
   0x1   :  { %13 = vsyncpa [#allocation6], 0 }
   0x2   :  { %14 = vsyncpa [#allocation9], 0 }
   0x3   :  { %15 = vsyncpa [#allocation4], 0  ;;  %s655_s24 = smov [#allocation5]   ;;  %s537_s28 = scalar_lea.hbm %s807_s1, 256 }
   0x4   :  { %s31_s25 = sshll.u32 %s655_s24, 4  ;;  %p538_p0 = scmp.ne.s32.totalorder %s807_s1, %s537_s28  ;;  %s32_s25 = int_to_ptr.vmem [resolvable:$true] %s31_s25 }
   0x5   :  { %p541_p1 = scmp.lt.u32.totalorder %s537_s28, %s807_s1 }
   0x7   :  { %p543_p2 = pnand %p541_p1, %p538_p0 }
   0x9   :  { %546 = shalt.err (!%p543_p2)
}
   0xa   :  { %s547_s10 = scalar_lea.vmem %s32_s25, 256  ;;  %p552_p4 = scmp.lt.s32.totalorder %s32_s25, %s32_s25 }
   0xb   :  { %p548_p3 = scmp.ne.s32.totalorder %s32_s25, %s547_s10  ;;  %p553_p5 = scmp.lt.s32.totalorder %s547_s10, %s547_s10 }
   0xd   :  { %p554_p6 = por %p553_p5, %p552_p4 }
   0xf   :  { %p555_p7 = pnand %p554_p6, %p548_p3 }
  0x11   :  { %558 = shalt.err (!%p555_p7)
}
  0x12   :  { %s656_s11 = smov 64   ;;  %s657_s12 = smov 4  }
  0x13   :  { %37 = dma.hbm_to_vmem [thread:$0]  %s807_s1, 256, %s32_s25, [#allocation6], %s656_s11, %s656_s11, %s657_s12  }
  0x14   :  { %s658_s15 = smov [#allocation2]   ;;  %s659_s17 = smov [#allocation7]  }
  0x15   :  { %s22_s16 = sshll.u32 %s658_s15, 4  ;;  %s45_s18 = sshll.u32 %s659_s17, 4  ;;  %s23_s16 = int_to_ptr.vmem [resolvable:$true] %s22_s16  ;;  %s46_s18 = int_to_ptr.vmem [resolvable:$true] %s45_s18 }
  0x16   :  { %s559_s21 = scalar_lea.hbm %s806_s0, 128 }
  0x17   :  { %p560_p8 = scmp.ne.s32.totalorder %s806_s0, %s559_s21  ;;  %p563_p9 = scmp.lt.u32.totalorder %s559_s21, %s806_s0 }
  0x19   :  { %p565_p10 = pnand %p563_p9, %p560_p8 }
  0x1b   :  { %568 = shalt.err (!%p565_p10)
}
  0x1c   :  { %s569_s1 = scalar_lea.vmem %s23_s16, 128  ;;  %p574_p12 = scmp.lt.s32.totalorder %s23_s16, %s23_s16 }
  0x1d   :  { %p570_p11 = scmp.ne.s32.totalorder %s23_s16, %s569_s1  ;;  %p575_p13 = scmp.lt.s32.totalorder %s569_s1, %s569_s1 }
  0x1f   :  { %p576_p0 = por %p575_p13, %p574_p12 }
  0x21   :  { %p577_p1 = pnand %p576_p0, %p570_p11 }
  0x23   :  { %580 = shalt.err (!%p577_p1)
}
  0x24   :  { %25 = dma.hbm_to_vmem [thread:$0]  %s806_s0, 128, %s23_s16, [#allocation3]  }
  0x25   :  { %s581_s30 = scalar_lea.hbm %s809_s3, 1024 }
  0x26   :  { %p582_p2 = scmp.ne.s32.totalorder %s809_s3, %s581_s30  ;;  %p585_p3 = scmp.lt.u32.totalorder %s581_s30, %s809_s3 }
  0x28   :  { %p587_p4 = pnand %p585_p3, %p582_p2 }
  0x2a   :  { %590 = shalt.err (!%p587_p4)
}
  0x2b   :  { %s591_s14 = scalar_lea.vmem %s46_s18, 1024  ;;  %p596_p6 = scmp.lt.s32.totalorder %s46_s18, %s46_s18 }
  0x2c   :  { %p592_p5 = scmp.ne.s32.totalorder %s46_s18, %s591_s14  ;;  %p597_p7 = scmp.lt.s32.totalorder %s591_s14, %s591_s14 }
  0x2e   :  { %p598_p8 = por %p597_p7, %p596_p6 }
  0x30   :  { %p599_p9 = pnand %p598_p8, %p592_p5 }
  0x32   :  { %602 = shalt.err (!%p599_p9)
}
  0x33   :  { %51 = dma.hbm_to_vmem [thread:$0]  %s809_s3, 1024, %s46_s18, [#allocation6], %s656_s11, %s656_s11, %s657_s12  }
  0x34   :  { %s660_s16 = smov [#allocation8]   ;;  %s603_s21 = scalar_lea.hbm %s811_s5, 1024 }
  0x35   :  { %s59_s17 = sshll.u32 %s660_s16, 4  ;;  %p604_p10 = scmp.ne.s32.totalorder %s811_s5, %s603_s21  ;;  %s60_s17 = int_to_ptr.vmem [resolvable:$true] %s59_s17 }
  0x36   :  { %p607_p11 = scmp.lt.u32.totalorder %s603_s21, %s811_s5 }
  0x38   :  { %p609_p12 = pnand %p607_p11, %p604_p10 }
  0x3a   :  { %612 = shalt.err (!%p609_p12)
}
  0x3b   :  { %s613_s1 = scalar_lea.vmem %s60_s17, 1024  ;;  %p618_p0 = scmp.lt.s32.totalorder %s60_s17, %s60_s17 }
  0x3c   :  { %p614_p13 = scmp.ne.s32.totalorder %s60_s17, %s613_s1  ;;  %p619_p1 = scmp.lt.s32.totalorder %s613_s1, %s613_s1 }
  0x3e   :  { %p620_p2 = por %p619_p1, %p618_p0 }
  0x40   :  { %p621_p3 = pnand %p620_p2, %p614_p13 }
  0x42   :  { %624 = shalt.err (!%p621_p3)
}
  0x43   :  { %65 = dma.hbm_to_vmem [thread:$0]  %s811_s5, 1024, %s60_s17, [#allocation9], %s656_s11, %s656_s11, %s657_s12  }
  0x44   :  { %647 = dma.done.wait [#allocation3], 128  }
  0x45   :  { %648 = vsyncadd [#allocation3], 4294967168 }
  0x46   :  { %649 = dma.done.wait [#allocation6], 1280  }
  0x47   :  { %650 = vsyncadd [#allocation6], 4294966016 }
  0x48   :  { %651 = dma.done.wait [#allocation9], 1024  }
  0x49   :  { %652 = vsyncadd [#allocation9], 4294966272  ;;  %v661_v0 = vmov 0.0   ;;  %vm662_vm0 = vmmov 0   ;;  %v509_v1 = vld [vmem:[#allocation5] sm:$0xff]   ;;  %v510_v2 = vld [vmem:[#allocation5 + $0x8] sm:$0xff]   ;;  %v377_v43 = vlaneseq }
  0x4a   :  { %452 = vmatprep.subr.bf16.mxu0 %v661_v0  ;;  %456 = vmatprep.mubr.msk.bf16.mxu0 %vm662_vm0, %v661_v0  ;;  %v81_v3 = vld [vmem:[#allocation2] sm:$0xff]  ;;  %v511_v4 = vld [vmem:[#allocation7] sm:$0xff]   ;;  %vm106_vm1 = vcmask 261120   ;;  %v513_v7 = vld [vmem:[#allocation7 + $0x10] sm:$0xff]  }
  0x4b   :  { %460 = vmatprep.subr.bf16.mxu1 %v661_v0  ;;  %476 = vmatprep.mubr.msk.bf16.mxu1 %vm662_vm0, %v661_v0  ;;  %v82_v5 = vpack.c.bf16 %v81_v3, %v81_v3  ;;  %v512_v6 = vld [vmem:[#allocation7 + $0x8] sm:$0xff]   ;;  %v514_v8 = vld [vmem:[#allocation7 + $0x18] sm:$0xff]   ;;  %v515_v9 = vld [vmem:[#allocation7 + $0x20] sm:$0xff]   ;;  %v378_v44 = vand.u32 127, %v377_v43 }
  0x4c   :  { %453 = vmatpush3.bf16.msra.mxu0 %v509_v1  ;;  %461 = vmatpush3.bf16.msra.mxu1 %v511_v4  ;;  %v516_v10 = vld [vmem:[#allocation7 + $0x28] sm:$0xff]   ;;  %v517_v11 = vld [vmem:[#allocation7 + $0x30] sm:$0xff]   ;;  %v518_v12 = vld [vmem:[#allocation7 + $0x38] sm:$0xff]  }
  0x4d   :  { %454 = vmatprep.subr.bf16.mxu0 %v661_v0  ;;  %462 = vmatprep.subr.bf16.mxu1 %v661_v0  ;;  %v519_v13 = vld [vmem:[#allocation8] sm:$0xff]   ;;  %v520_v14 = vld [vmem:[#allocation8 + $0x8] sm:$0xff]   ;;  %v521_v15 = vld [vmem:[#allocation8 + $0x10] sm:$0xff]   ;;  %vm379_vm2 = vcmp.lt.s32.totalorder %v378_v44, 16 }
  0x4e   :  { %v522_v16 = vld [vmem:[#allocation8 + $0x18] sm:$0xff]   ;;  %v409_v17 = vld [vmem:[%s808_s2] ss:$0 sm:$0xff]  ;;  %v523_v25 = vld [vmem:[#allocation8 + $0x20] sm:$0xff]  }
  0x4f   :  { %v524_v26 = vld [vmem:[#allocation8 + $0x28] sm:$0xff]   ;;  %v525_v27 = vld [vmem:[#allocation8 + $0x30] sm:$0xff]   ;;  %v526_v28 = vld [vmem:[#allocation8 + $0x38] sm:$0xff]  }
  0x50   :  { %455 = vmatpush3.bf16.msra.mxu0 %v510_v2  ;;  %463 = vmatpush3.bf16.msra.mxu1 %v512_v6  ;;  %v413_v29 = vld [vmem:[%s810_s4] ss:$0 sm:$0xff]  ;;  %s663_s4 = smov [#allocation10]  }
  0x51   :  { %480 = vmatprep.subr.bf16.mxu0 %v661_v0  ;;  %464 = vmatprep.subr.bf16.mxu1 %v661_v0  ;;  %v422_v37 = vld [vmem:[%s812_s6] ss:$0 sm:$0xff]  ;;  %s398_s6 = sshll.u32 %s663_s4, 4  ;;  %s399_s6 = int_to_ptr.vmem [resolvable:$true] %s398_s6 }
  0x52   :  { %s625_s28 = scalar_lea.vmem %s399_s6, 128  ;;  %p630_p5 = scmp.lt.s32.totalorder %s399_s6, %s399_s6 }
  0x53   :  { %457 = vmatmul.mubr.msk.bf16.vlgmr.msra.gmra.mrb[0].mxu0 %vm106_vm1, %v82_v5  ;;  %p626_p4 = scmp.ne.s32.totalorder %s399_s6, %s625_s28  ;;  %p631_p6 = scmp.lt.s32.totalorder %s625_s28, %s625_s28 }
  0x54   :  { %496 = vmatprep.mubr.msk.bf16.mxu0 %vm662_vm0, %v661_v0  ;;  %465 = vmatpush3.bf16.msra.mxu1 %v513_v7 }
  0x55   :  { %466 = vmatprep.subr.bf16.mxu1 %v661_v0  ;;  %481 = vmatpush3.bf16.msra.mxu0 %v519_v13  ;;  %p632_p7 = por %p631_p6, %p630_p5 }
  0x56   :  { %482 = vmatprep.subr.bf16.mxu0 %v661_v0 }
  0x57   :  { %p633_p8 = pnand %p632_p7, %p626_p4 }
  0x58   :  { %467 = vmatpush3.bf16.msra.mxu1 %v514_v8 }
  0x59   :  { %468 = vmatprep.subr.bf16.mxu1 %v661_v0  ;;  %483 = vmatpush3.bf16.msra.mxu0 %v520_v14 }
  0x5a   :  { %484 = vmatprep.subr.bf16.mxu0 %v661_v0 }
  0x5c   :  { %469 = vmatpush3.bf16.msra.mxu1 %v515_v9 }
  0x5d   :  { %470 = vmatprep.subr.bf16.mxu1 %v661_v0  ;;  %485 = vmatpush3.bf16.msra.mxu0 %v521_v15 }
  0x5e   :  { %486 = vmatprep.subr.bf16.mxu0 %v661_v0 }
  0x60   :  { %471 = vmatpush3.bf16.msra.mxu1 %v516_v10 }
  0x61   :  { %472 = vmatprep.subr.bf16.mxu1 %v661_v0  ;;  %487 = vmatpush3.bf16.msra.mxu0 %v522_v16 }
  0x62   :  { %488 = vmatprep.subr.bf16.mxu0 %v661_v0 }
  0x64   :  { %473 = vmatpush3.bf16.msra.mxu1 %v517_v11 }
  0x65   :  { %474 = vmatprep.subr.bf16.mxu1 %v661_v0  ;;  %489 = vmatpush3.bf16.msra.mxu0 %v523_v25 }
  0x66   :  { %490 = vmatprep.subr.bf16.mxu0 %v661_v0 }
  0x68   :  { %475 = vmatpush3.bf16.msra.mxu1 %v518_v12 }
  0x69   :  { %491 = vmatpush3.bf16.msra.mxu0 %v524_v26 }
  0x6a   :  { %492 = vmatprep.subr.bf16.mxu0 %v661_v0 }
  0x6d   :  { %493 = vmatpush3.bf16.msra.mxu0 %v525_v27 }
  0x6e   :  { %494 = vmatprep.subr.bf16.mxu0 %v661_v0 }
  0x71   :  { %495 = vmatpush3.bf16.msra.mxu0 %v526_v28 }
 0x126   :  { %v144_v18 = vpop.f32.mrb[0].mxu0 }
 0x127   :  { %v145_v19 = vadd.f32 %v409_v17, %v144_v18  ;;  %v458_v20 = vpop.f32.mrb[1].mxu0 }
 0x128   :  { %v147_v21 = vpop.f32.mrb[2].mxu0 }
 0x129   :  { %527 = vtanh.f32 %v145_v19  ;;  %v459_v22 = vpop.f32.mrb[3].mxu0 }
 0x133   :  { %v528_v23 = vpop.eup %527 }
 0x134   :  { %v151_v24 = vpack.c.bf16 %v528_v23, %v528_v23 }
 0x136   :  { %477 = vmatmul.mubr.bf16.vlgmr.msra.gmra.mrb[0].mxu1 %v151_v24 }
 0x209   :  { %v257_v30 = vpop.f32.mrb[0].mxu1 }
 0x20a   :  { %v258_v31 = vadd.f32 %v413_v29, %v257_v30  ;;  %v478_v32 = vpop.f32.mrb[1].mxu1 }
 0x20b   :  { %v260_v33 = vpop.f32.mrb[2].mxu1 }
 0x20c   :  { %529 = vtanh.f32 %v258_v31  ;;  %v479_v34 = vpop.f32.mrb[3].mxu1 }
 0x216   :  { %v530_v35 = vpop.eup %529 }
 0x217   :  { %v264_v36 = vpack.c.bf16 %v530_v35, %v530_v35 }
 0x219   :  { %497 = vmatmul.mubr.bf16.vlgmr.msra.gmra.mrb[4].mxu0 %v264_v36 }
 0x2ec   :  { %v370_v38 = vpop.f32.mrb[4].mxu0 }
 0x2ed   :  { %v371_v39 = vadd.f32 %v422_v37, %v370_v38  ;;  %v498_v40 = vpop.f32.mrb[5].mxu0 }
 0x2ee   :  { %v373_v41 = vpop.f32.mrb[6].mxu0 }
 0x2ef   :  { %531 = vtanh.f32 %v371_v39  ;;  %v499_v42 = vpop.f32.mrb[7].mxu0 }
 0x2f9   :  { %v532_v45 = vpop.eup %531 }
 0x2fa   :  { %v380_v46 = vsel %vm379_vm2, %v532_v45, -1e+30 }
 0x2fb   :  { %381 = vmax.xlane.f32.xlu0 %v380_v46 }
 0x388   :  { %v382_v47 = vpop.xlane.xlu0 %381 }
 0x389   :  { %v383_v48 = vsub.f32 %v380_v46, %v382_v47 }
 0x38b   :  { %v384_v49 = vmul.f32 1.442695, %v383_v48 }
 0x38d   :  { %533 = vpow2.f32 %v384_v49 }
 0x397   :  { %v534_v50 = vpop.eup %533 }
 0x398   :  { %386 = vadd.xlane.f32.xlu0 %v534_v50 }
 0x425   :  { %v387_v51 = vpop.xlane.xlu0 %386 }
 0x426   :  { %535 = vlog2.f32 %v387_v51 }
 0x430   :  { %v536_v52 = vpop.eup %535 }
 0x431   :  { %v389_v53 = vmul.f32 0.6931472, %v536_v52 }
 0x433   :  { %v390_v54 = vsub.f32 %v383_v48, %v389_v53 }
 0x435   :  { %391 = vst [vmem:[#allocation10] sm:$0xff] %v390_v54 }
 0x436   :  { %636 = shalt.err (!%p633_p8)
}
 0x437   :  { %s637_s8 = scalar_lea.hbm %s813_s7, 128 }
 0x438   :  { %p638_p9 = scmp.ne.s32.totalorder %s813_s7, %s637_s8  ;;  %p641_p10 = scmp.lt.u32.totalorder %s637_s8, %s813_s7 }
 0x43a   :  { %p643_p11 = pnand %p641_p10, %p638_p9 }
 0x43c   :  { %646 = shalt.err (!%p643_p11)
}
 0x43d   :  { %401 = dma.vmem_to_hbm [thread:$0]  %s399_s6, 128, %s813_s7, [#allocation4]  }
 0x43e   :  { %653 = dma.done.wait [#allocation4], 128  }
 0x43f   :  { %654 = vsyncadd [#allocation4], 4294967168 }
 0x440   :  { %405 = vsyncpa [#allocation3], 1 }
 0x441   :  { %406 = vsyncpa [#allocation6], 1 }
 0x442   :  { %407 = vsyncpa [#allocation9], 1 }
 0x443   :  { %408 = vsyncpa [#allocation4], 1 }

</bundles_post_ra>
